<compile_context>
chip_gen: v7x
topology: tpu7x:2x2x1
jax: 0.10.0
libtpu: 0.0.40
codegen_flags: <defaults>
</compile_context>

<pallas_src>
import functools

import jax
import jax.numpy as jnp
from jax.experimental import pallas as pl
from jax.experimental.pallas import tpu as pltpu


def _se_gate_kernel(gate_ref, x_ref, o_ref, *, approx_recip):
    # gate_ref: (tile_r, 1); x_ref / o_ref: (tile_r, HW).
    g = gate_ref[...].astype(jnp.float32)
    if approx_recip:
        # sigmoid = 1 / (1 + exp(-g)); approximate reciprocal runs on the
        # otherwise-idle EUP slot.  Only used for sub-f32 dtypes where the
        # approximation error is far below the output rounding error.
        s = pl.reciprocal(1.0 + jnp.exp(-g), approx=True)
    else:
        s = jax.nn.sigmoid(g)
    # Multiply the big tile in its native dtype (no full-tile f32 temporary).
    o_ref[...] = (s.astype(x_ref.dtype) * x_ref[...]).astype(o_ref.dtype)


def _round_up(v, m):
    return ((v + m - 1) // m) * m


def _chip_is_v7x():
    try:
        kind = jax.devices()[0].device_kind.lower()
    except Exception:
        return False
    return ("v7" in kind) or ("7x" in kind)


def _pick_tile_rows(rows, hw, dt_bytes, min_sub, n_cores, vmem_budget):
    # Per grid step we hold double-buffered x-in and out tiles (4x) plus ~1
    # tile worth of live temporaries / gate slack -> ~5 * tile_r * hw * bytes.
    bytes_per_row_set = 5 * hw * dt_bytes
    max_by_vmem = max(min_sub,
                      (vmem_budget // bytes_per_row_set) // min_sub * min_sub)
    if n_cores <= 1:
        # Single TensorCore (v5e/v6e): one big block -> grid=(1,) whenever it
        # fits; per-grid-step overhead is a large fraction of runtime here.
        return rows if rows <= max_by_vmem else max_by_vmem
    # v7x: split rows across the TensorCores, but never exceed the VMEM cap.
    per_core = _round_up(pl.cdiv(rows, n_cores), min_sub)
    if per_core >= rows:
        return rows
    return min(max_by_vmem, per_core)


def sigmoid_mul(gate, x, *, tile_r=None):
    """gate: (N, C, 1, 1), x: (N, C, H, W)  ->  sigmoid(gate) * x."""
    N, C, H, W = x.shape
    assert gate.shape == (N, C, 1, 1)
    rows = N * C
    hw = H * W

    # (N*C, H*W): channels on sublanes, spatial on lanes; gate -> (N*C, 1).
    # TODO(synk): if upstream can hand us NHWC, an (N*H*W, C) layout with
    # C=1056 on lanes is ~92% lane utilization vs ~77% here (hw=196).
    x2 = x.reshape(rows, hw)
    g2 = gate.reshape(rows, 1)

    dt_bytes = jnp.dtype(x.dtype).itemsize
    # Min sublane multiple per dtype packing: f32 -> 8, bf16 -> 16, 8-bit -> 32.
    min_sub = {4: 8, 2: 16, 1: 32}.get(dt_bytes, 8)

    is_v7x = _chip_is_v7x()
    n_cores = 2 if is_v7x else 1
    # v7x: 64 MiB physical / 32 MiB scoped VMEM; v5e/v6e: 128 MiB physical.
    vmem_budget = (24 if is_v7x else 64) * 1024 * 1024

    if tile_r is None:
        tile_r = _pick_tile_rows(rows, hw, dt_bytes, min_sub, n_cores,
                                 vmem_budget)

    grid = (pl.cdiv(rows, tile_r),)

    # Only request an explicit per-core split when the grid was sized for it
    # (v7x, one block per TensorCore); plain "parallel" otherwise.
    if n_cores > 1 and grid[0] == n_cores:
        semantics = (pltpu.CORE_PARALLEL,)
    else:
        semantics = ("parallel",)

    # Raise the scoped-VMEM limit just enough to hold the chosen tiles.
    needed = 5 * tile_r * hw * dt_bytes + (1 << 20)
    vmem_limit = int(min(vmem_budget + (4 << 20), max(needed, 16 << 20)))

    kernel = functools.partial(_se_gate_kernel,
                               approx_recip=(x.dtype != jnp.float32))

    out2 = pl.pallas_call(
        kernel,
        out_shape=jax.ShapeDtypeStruct((rows, hw), x.dtype),
        grid=grid,
        in_specs=[
            pl.BlockSpec((tile_r, 1), lambda i: (i, 0),
                         memory_space=pltpu.MemorySpace.VMEM),
            pl.BlockSpec((tile_r, hw), lambda i: (i, 0),
                         memory_space=pltpu.MemorySpace.VMEM),
        ],
        out_specs=pl.BlockSpec((tile_r, hw), lambda i: (i, 0),
                               memory_space=pltpu.MemorySpace.VMEM),
        compiler_params=pltpu.CompilerParams(
            dimension_semantics=semantics,
            vmem_limit_bytes=vmem_limit,
        ),
    )(g2, x2)

    return out2.reshape(N, C, H, W)


if __name__ == "__main__":
    # Small shapes consistent with the module's (1, 1056, 14, 14) semantics.
    N, C, H, W = 2, 4, 16, 16
    key = jax.random.PRNGKey(0)
    k1, k2 = jax.random.split(key)
    x326 = jax.random.normal(k1, (N, C, H, W), dtype=jnp.float32)
    x330 = jax.random.normal(k2, (N, C, 1, 1), dtype=jnp.float32)

    out = sigmoid_mul(x330, x326)
    out = jax.block_until_ready(out)

    # reference check in plain JAX (f32 path uses the exact sigmoid).
    ref = jax.nn.sigmoid(x330) * x326
    assert out.shape == (N, C, H, W)
    assert jnp.allclose(out, ref, atol=1e-6, rtol=1e-6)

    print("KERNEL_OK")
</pallas_src>

<mosaic_0001>
module attributes {stable_mosaic.version = 11 : i64} {
  func.func @_se_gate_kernel(%arg0: i32, %arg1: memref<8x1xf32, #tpu.memory_space<vmem>>, %arg2: memref<8x256xf32, #tpu.memory_space<vmem>>, %arg3: memref<8x256xf32, #tpu.memory_space<vmem>>) attributes {dimension_semantics = [#tpu.dimension_semantics<parallel>], iteration_bounds = array<i64: 1>, scalar_prefetch = 0 : i64, scratch_operands = 0 : i64, tpu.core_type = #tpu.core_type<tc>, window_params = [{transform_indices = @transform_0, window_bounds = array<i64: 8, 1>}, {transform_indices = @transform_1, window_bounds = array<i64: 8, 256>}, {transform_indices = @transform_2, window_bounds = array<i64: 8, 256>}]} {
    %c0 = arith.constant 0 : index
    %c0_0 = arith.constant 0 : index
    %0 = vector.load %arg1[%c0, %c0_0] : memref<8x1xf32, #tpu.memory_space<vmem>>, vector<8x1xf32>
    %1 = arith.negf %0 : vector<8x1xf32>
    %2 = math.exp %1 : vector<8x1xf32>
    %cst = arith.constant 1.000000e+00 : f32
    %3 = vector.broadcast %cst : f32 to vector<8x1xf32>
    %4 = arith.addf %3, %2 : vector<8x1xf32>
    %5 = arith.divf %3, %4 : vector<8x1xf32>
    %c0_1 = arith.constant 0 : index
    %c0_2 = arith.constant 0 : index
    %6 = vector.load %arg2[%c0_1, %c0_2] : memref<8x256xf32, #tpu.memory_space<vmem>>, vector<8x256xf32>
    %7 = vector.broadcast %5 : vector<8x1xf32> to vector<8x256xf32>
    %8 = arith.mulf %7, %6 : vector<8x256xf32>
    %c0_3 = arith.constant 0 : index
    %c0_4 = arith.constant 0 : index
    %9 = vector.load %arg3[%c0_3, %c0_4] : memref<8x256xf32, #tpu.memory_space<vmem>>, vector<8x256xf32>
    tpu.vector_store %arg3[%c0_3, %c0_4], %8 {strides = array<i32>} : memref<8x256xf32, #tpu.memory_space<vmem>>, vector<8x256xf32>,
    return
  }
  func.func @transform_0(%arg0: i32) -> (i32, i32) {
    %c0_i32 = arith.constant 0 : i32
    %c0_i32_0 = arith.constant 0 : i32
    return %arg0, %c0_i32 : i32, i32
  }
  func.func @transform_1(%arg0: i32) -> (i32, i32) {
    %c0_i32 = arith.constant 0 : i32
    %c0_i32_0 = arith.constant 0 : i32
    return %arg0, %c0_i32 : i32, i32
  }
  func.func @transform_2(%arg0: i32) -> (i32, i32) {
    %c0_i32 = arith.constant 0 : i32
    %c0_i32_0 = arith.constant 0 : i32
    return %arg0, %c0_i32 : i32, i32
  }
}

</mosaic_0001>

<bundles_post_ra>
// kernel: tpu_custom_call.1
= control target key start
LH: loop header
LB: loop body
LE: loop exit
PB: predicated region body
PF: predicated region fallthrough
CT: control target
= control target key end

     0   :  { %7 = vsyncpa [#allocation3], 0  ;;  %s159_s0 = inlined_call_operand.vmem [shape: f32[8,1], index: 0, kind: input, shape index: {}]   ;;  %s160_s1 = inlined_call_operand.hbm [shape: f32[8,256], index: 1, kind: input, shape index: {}]   ;;  %s161_s2 = inlined_call_operand.hbm [shape: f32[8,256], index: 2, kind: output, shape index: {}]  }
   0x1   :  { %8 = vsyncpa [#allocation4], 0  ;;  %s114_s9 = smov [#allocation2]   ;;  %s66_s13 = scalar_lea.hbm %s160_s1, 256 }
   0x2   :  { %s17_s10 = sshll.u32 %s114_s9, 4  ;;  %p67_p0 = scmp.ne.s32.totalorder %s160_s1, %s66_s13  ;;  %s18_s10 = int_to_ptr.vmem [resolvable:$true] %s17_s10 }
   0x3   :  { %p70_p1 = scmp.lt.u32.totalorder %s66_s13, %s160_s1 }
   0x5   :  { %p72_p2 = pnand %p70_p1, %p67_p0 }
   0x7   :  { %75 = shalt.err (!%p72_p2)
}
   0x8   :  { %s76_s18 = scalar_lea.vmem %s18_s10, 256  ;;  %p81_p4 = scmp.lt.s32.totalorder %s18_s10, %s18_s10 }
   0x9   :  { %p77_p3 = scmp.ne.s32.totalorder %s18_s10, %s76_s18  ;;  %p82_p5 = scmp.lt.s32.totalorder %s76_s18, %s76_s18 }
   0xb   :  { %p83_p6 = por %p82_p5, %p81_p4 }
   0xd   :  { %p84_p7 = pnand %p83_p6, %p77_p3 }
   0xf   :  { %87 = shalt.err (!%p84_p7)
}
  0x10   :  { %20 = dma.hbm_to_vmem [thread:$0]  %s160_s1, 256, %s18_s10, [#allocation3]  }
  0x11   :  { %110 = dma.done.wait [#allocation3], 256  }
  0x12   :  { %111 = vsyncadd [#allocation3], 4294967040  ;;  %v115_v0 = vmov 0   ;;  %v24_v1 = vld [vmem:[%s159_s0] sm:$0xff]  ;;  %v32_v7 = vld [vmem:[#allocation2 + $0x8] sm:$0xff]  ;;  %s116_s23 = smov [#allocation5]  }
  0x13   :  { %61 = vset.pattern.permute.xlu0 %v115_v0  ;;  %v57_v2 = vmul.f32 -1.442695, %v24_v1  ;;  %v31_v6 = vld [vmem:[#allocation2] sm:$0xff]  ;;  %s48_s24 = sshll.u32 %s116_s23, 4  ;;  %s49_s24 = int_to_ptr.vmem [resolvable:$true] %s48_s24 }
  0x14   :  { %s88_s1 = scalar_lea.vmem %s49_s24, 256  ;;  %p93_p9 = scmp.lt.s32.totalorder %s49_s24, %s49_s24 }
  0x15   :  { %62 = vpow2.f32 %v57_v2  ;;  %p89_p8 = scmp.ne.s32.totalorder %s49_s24, %s88_s1  ;;  %p94_p10 = scmp.lt.s32.totalorder %s88_s1, %s88_s1 }
  0x17   :  { %p95_p11 = por %p94_p10, %p93_p9 }
  0x19   :  { %p96_p12 = pnand %p95_p11, %p89_p8 }
  0x1f   :  { %v63_v3 = vpop.eup %62 }
  0x20   :  { %v28_v4 = vadd.f32 1.0, %v63_v3 }
  0x22   :  { %64 = vrcp.f32 %v28_v4 }
  0x2c   :  { %v65_v5 = vpop.eup %64 }
  0x2d   :  { %35 = vperm.xlu0 %61, %v65_v5  }
  0xac   :  { %v36_v8 = vpop.permute.xlu0 %35 }
  0xad   :  { %v38_v9 = vmul.f32 %v36_v8, %v31_v6  ;;  %v39_v10 = vmul.f32 %v36_v8, %v32_v7 }
  0xaf   :  { %40 = vst [vmem:[#allocation5] sm:$0xff] %v38_v9  ;;  %41 = vst [vmem:[#allocation5 + $0x8] sm:$0xff] %v39_v10 }
  0xb0   :  { %99 = shalt.err (!%p96_p12)
}
  0xb1   :  { %s100_s26 = scalar_lea.hbm %s161_s2, 256 }
  0xb2   :  { %p101_p13 = scmp.ne.s32.totalorder %s161_s2, %s100_s26  ;;  %p104_p0 = scmp.lt.u32.totalorder %s100_s26, %s161_s2 }
  0xb4   :  { %p106_p1 = pnand %p104_p0, %p101_p13 }
  0xb6   :  { %109 = shalt.err (!%p106_p1)
}
  0xb7   :  { %51 = dma.vmem_to_hbm [thread:$0]  %s49_s24, 256, %s161_s2, [#allocation4]  }
  0xb8   :  { %112 = dma.done.wait [#allocation4], 256  }
  0xb9   :  { %113 = vsyncadd [#allocation4], 4294967040 }
  0xba   :  { %55 = vsyncpa [#allocation3], 1 }
  0xbb   :  { %56 = vsyncpa [#allocation4], 1 }

</bundles_post_ra>
